<compile_context>
chip_gen: v7x
topology: tpu7x:2x2x1
jax: 0.10.0
libtpu: 0.0.40
codegen_flags: <defaults>
</compile_context>

<pallas_src>
import jax
import jax.numpy as jnp
from jax.experimental import pallas as pl
from jax.experimental.pallas import tpu as pltpu


def _mlp_kernel(x_ref, w1t_ref, b1_ref, w2_ref, b2_ref, o_ref):
    # Layer 1: h = ReLU(x @ W1^T + b1).
    # W1 was pre-transposed in the wrapper to (dim, hidden) -> plain NN dot,
    # f32 accumulation on the MXU, no in-loop transposes.
    h = jnp.dot(x_ref[...], w1t_ref[...],
                preferred_element_type=jnp.float32)            # (TM, H) f32
    h = jnp.maximum(h + b1_ref[...], 0.0)                      # b1 already f32

    # Layer 2 off the MXU: o[j] = sum_k h[j,k] * w2[0,k]  (VPU mul + lane
    # reduce on the XLU).  Avoids transposing h and a 1/128-utilized GEMV.
    o = jnp.sum(h * w2_ref[...], axis=-1, keepdims=True)       # (TM, 1) f32
    o_ref[...] = (o + b2_ref[...]).astype(o_ref.dtype)


def _round_up(n, m):
    return (n + m - 1) // m * m


def network_exploitation_forward(x, w1, b1, w2, b2, *, block_b=1024,
                                 stream_dtype=None):
    """Forward pass of Network_exploitation: fc2(ReLU(fc1(x))).

    x : (B, dim)      w1: (hidden, dim)  b1: (hidden,)
    w2: (1, hidden)   b2: (1,)
    Returns (B, 1), matching the PyTorch module.

    stream_dtype: optionally bf16 to halve HBM bytes for x / W1 (accumulation
    stays f32); leave None for strict f32 parity.
    """
    B, dim = x.shape
    hidden = w1.shape[0]
    out_dtype = x.dtype

    # ---- Wrapper-side layout / dtype plumbing (amortized, off the grid loop)
    if stream_dtype is not None:
        x = x.astype(stream_dtype)
        w1 = w1.astype(stream_dtype)
    w1t = jnp.transpose(w1)                              # one-time (dim, hidden)
    b1f = jnp.asarray(b1, jnp.float32).reshape(1, hidden)
    w2f = jnp.asarray(w2, jnp.float32).reshape(1, hidden)
    b2f = jnp.asarray(b2, jnp.float32).reshape(1, 1)

    # ---- Batch tile: multiple of 8 (sublane) unless it is the whole batch.
    # When the batch is large enough, split into >= 2 tiles so the "parallel"
    # grid axis keeps both v7x TensorCores busy (no-op on v5e/v6e).
    block_b = max(8, _round_up(block_b, 8))
    if B > block_b:
        tm = block_b
    elif B >= 16:
        tm = min(_round_up(pl.cdiv(B, 2), 8), _round_up(B, 8))
    else:
        tm = B
    grid_b = pl.cdiv(B, tm)

    # ---- VMEM budget: resident weights (worst case double-buffered), the
    # double-buffered x / out tiles, AND the (tm, hidden) f32 intermediate h
    # plus an elementwise temp, with ~30% headroom.  Ceiling follows the
    # chip's real VMEM capacity (v7x 64 MiB, v5e/v6e 128 MiB) when queryable.
    act_bytes = jnp.dtype(x.dtype).itemsize
    w_bytes_r = (dim * hidden * jnp.dtype(w1t.dtype).itemsize
                 + (2 * hidden + 1) * 4)                       # w1t + b1/w2/b2 (f32)
    tile_stream = 2 * tm * dim * act_bytes + 2 * tm * jnp.dtype(out_dtype).itemsize
    h_scratch = 2 * tm * hidden * 4
    need = 2 * w_bytes_r + tile_stream + h_scratch
    vmem_limit = int(1.3 * need) + (2 << 20)
    try:
        cap = getattr(pltpu.get_tpu_info(), "vmem_capacity_bytes", None)
    except Exception:  # pragma: no cover - info query unavailable
        cap = None
    ceiling = (cap * 3 // 4) if cap else (48 << 20)
    vmem_limit = int(max(16 << 20, min(vmem_limit, ceiling)))
    # For huge hidden*dim where W1^T no longer fits VMEM, an inner "arbitrary"
    # grid axis over hidden with a (tm,1) accumulator would be needed; the
    # module's hidden_size (default 100) is far below that regime.

    def run(single_buffer_weights):
        resident = ({"pipeline_mode": pl.Buffered(1)}
                    if single_buffer_weights else {})
        in_specs = [
            pl.BlockSpec((tm, dim), lambda i: (i, 0)),                    # x streamed
            pl.BlockSpec((dim, hidden), lambda i: (0, 0), **resident),    # W1^T resident
            pl.BlockSpec((1, hidden), lambda i: (0, 0), **resident),      # b1 resident
            pl.BlockSpec((1, hidden), lambda i: (0, 0), **resident),      # w2 resident
            pl.BlockSpec((1, 1), lambda i: (0, 0), **resident),           # b2 resident
        ]
        return pl.pallas_call(
            _mlp_kernel,
            out_shape=jax.ShapeDtypeStruct((B, 1), out_dtype),
            grid=(grid_b,),
            in_specs=in_specs,
            out_specs=pl.BlockSpec((tm, 1), lambda i: (i, 0)),
            compiler_params=pltpu.CompilerParams(
                dimension_semantics=("parallel",),
                vmem_limit_bytes=vmem_limit,
            ),
        )(x, w1t, b1f, w2f, b2f)

    try:
        # Single-buffer the loop-invariant operands (big VMEM saver on v7x).
        return run(True)
    except Exception:
        # Fallback: default double-buffering if Buffered(1) is unsupported.
        return run(False)


if __name__ == "__main__":
    # Small shapes consistent with the module's forward (2D input, Linear layers).
    B, dim, hidden = 8, 16, 32

    key = jax.random.PRNGKey(0)
    kx, k1, kb1, k2, kb2 = jax.random.split(key, 5)

    x = jax.random.normal(kx, (B, dim), dtype=jnp.float32)
    # Deterministic synthetic parameters (PyTorch nn.Linear shape convention).
    w1 = jax.random.normal(k1, (hidden, dim), dtype=jnp.float32) * 0.1
    b1 = jax.random.normal(kb1, (hidden,), dtype=jnp.float32) * 0.1
    w2 = jax.random.normal(k2, (1, hidden), dtype=jnp.float32) * 0.1
    b2 = jax.random.normal(kb2, (1,), dtype=jnp.float32) * 0.1

    ref = jnp.maximum(x @ w1.T + b1, 0.0) @ w2.T + b2

    out = network_exploitation_forward(x, w1, b1, w2, b2)
    jax.block_until_ready(out)
    assert out.shape == (B, 1)
    assert jnp.allclose(out, ref, atol=1e-5, rtol=1e-5)

    # Multi-tile path: >= 2 grid steps (v7x dual-TC) and a partial last tile.
    B2 = 300
    x2 = jax.random.normal(jax.random.PRNGKey(1), (B2, dim), dtype=jnp.float32)
    ref2 = jnp.maximum(x2 @ w1.T + b1, 0.0) @ w2.T + b2
    out2 = network_exploitation_forward(x2, w1, b1, w2, b2, block_b=128)
    jax.block_until_ready(out2)
    assert out2.shape == (B2, 1)
    assert jnp.allclose(out2, ref2, atol=1e-5, rtol=1e-5)

    # Optional bf16 streaming path (f32 accumulation, looser tolerance).
    out3 = network_exploitation_forward(x2, w1, b1, w2, b2,
                                        stream_dtype=jnp.bfloat16)
    jax.block_until_ready(out3)
    assert out3.shape == (B2, 1)
    assert jnp.allclose(out3, ref2, atol=5e-2, rtol=5e-2)

    print("KERNEL_OK")
</pallas_src>

<mosaic_0001>
module attributes {stable_mosaic.version = 11 : i64} {
  func.func @_mlp_kernel(%arg0: i32, %arg1: memref<8x16xf32, #tpu.memory_space<vmem>>, %arg2: memref<16x32xf32, #tpu.memory_space<vmem>>, %arg3: memref<1x32xf32, #tpu.memory_space<vmem>>, %arg4: memref<1x32xf32, #tpu.memory_space<vmem>>, %arg5: memref<1x1xf32, #tpu.memory_space<vmem>>, %arg6: memref<8x1xf32, #tpu.memory_space<vmem>>) attributes {dimension_semantics = [#tpu.dimension_semantics<parallel>], iteration_bounds = array<i64: 1>, scalar_prefetch = 0 : i64, scratch_operands = 0 : i64, tpu.core_type = #tpu.core_type<tc>, window_params = [{transform_indices = @transform_0, window_bounds = array<i64: 8, 16>}, {pipeline_mode = #tpu.pipeline_mode<synchronous>, transform_indices = @transform_1, window_bounds = array<i64: 16, 32>}, {pipeline_mode = #tpu.pipeline_mode<synchronous>, transform_indices = @transform_2, window_bounds = array<i64: 1, 32>}, {pipeline_mode = #tpu.pipeline_mode<synchronous>, transform_indices = @transform_3, window_bounds = array<i64: 1, 32>}, {pipeline_mode = #tpu.pipeline_mode<synchronous>, transform_indices = @transform_4, window_bounds = array<i64: 1, 1>}, {transform_indices = @transform_5, window_bounds = array<i64: 8, 1>}]} {
    %c0 = arith.constant 0 : index
    %c0_0 = arith.constant 0 : index
    %0 = vector.load %arg1[%c0, %c0_0] : memref<8x16xf32, #tpu.memory_space<vmem>>, vector<8x16xf32>
    %c0_1 = arith.constant 0 : index
    %c0_2 = arith.constant 0 : index
    %1 = vector.load %arg2[%c0_1, %c0_2] : memref<16x32xf32, #tpu.memory_space<vmem>>, vector<16x32xf32>
    %cst = arith.constant dense<0.000000e+00> : vector<8x32xf32>
    %2 = tpu.matmul %0, %1, %cst {dimension_numbers = #tpu.dot_dimension_numbers<[1], [0], [0], [1], [0, 0, 1, 1], [], []>} : vector<8x16xf32>, vector<16x32xf32>, vector<8x32xf32> -> vector<8x32xf32>
    %c0_3 = arith.constant 0 : index
    %c0_4 = arith.constant 0 : index
    %3 = vector.load %arg3[%c0_3, %c0_4] : memref<1x32xf32, #tpu.memory_space<vmem>>, vector<1x32xf32>
    %4 = vector.broadcast %3 : vector<1x32xf32> to vector<8x32xf32>
    %5 = arith.addf %2, %4 : vector<8x32xf32>
    %cst_5 = arith.constant 0.000000e+00 : f32
    %6 = vector.broadcast %cst_5 : f32 to vector<8x32xf32>
    %7 = arith.maximumf %5, %6 : vector<8x32xf32>
    %c0_6 = arith.constant 0 : index
    %c0_7 = arith.constant 0 : index
    %8 = vector.load %arg4[%c0_6, %c0_7] : memref<1x32xf32, #tpu.memory_space<vmem>>, vector<1x32xf32>
    %9 = vector.broadcast %8 : vector<1x32xf32> to vector<8x32xf32>
    %10 = arith.mulf %7, %9 : vector<8x32xf32>
    %cst_8 = arith.constant dense<0.000000e+00> : vector<8xf32>
    %11 = vector.multi_reduction <add>, %10, %cst_8 [1] : vector<8x32xf32> to vector<8xf32>
    %12 = vector.shape_cast %11 : vector<8xf32> to vector<8x1xf32>
    %c0_9 = arith.constant 0 : index
    %c0_10 = arith.constant 0 : index
    %13 = vector.load %arg5[%c0_9, %c0_10] : memref<1x1xf32, #tpu.memory_space<vmem>>, vector<1x1xf32>
    %14 = vector.broadcast %13 : vector<1x1xf32> to vector<8x1xf32>
    %15 = arith.addf %12, %14 : vector<8x1xf32>
    %c0_11 = arith.constant 0 : index
    %c0_12 = arith.constant 0 : index
    %16 = vector.load %arg6[%c0_11, %c0_12] : memref<8x1xf32, #tpu.memory_space<vmem>>, vector<8x1xf32>
    tpu.vector_store %arg6[%c0_11, %c0_12], %15 {strides = array<i32>} : memref<8x1xf32, #tpu.memory_space<vmem>>, vector<8x1xf32>,
    return
  }
  func.func @transform_0(%arg0: i32) -> (i32, i32) {
    %c0_i32 = arith.constant 0 : i32
    %c0_i32_0 = arith.constant 0 : i32
    return %arg0, %c0_i32 : i32, i32
  }
  func.func @transform_1(%arg0: i32) -> (i32, i32) {
    %c0_i32 = arith.constant 0 : i32
    %c0_i32_0 = arith.constant 0 : i32
    %c0_i32_1 = arith.constant 0 : i32
    return %c0_i32, %c0_i32_0 : i32, i32
  }
  func.func @transform_2(%arg0: i32) -> (i32, i32) {
    %c0_i32 = arith.constant 0 : i32
    %c0_i32_0 = arith.constant 0 : i32
    %c0_i32_1 = arith.constant 0 : i32
    return %c0_i32, %c0_i32_0 : i32, i32
  }
  func.func @transform_3(%arg0: i32) -> (i32, i32) {
    %c0_i32 = arith.constant 0 : i32
    %c0_i32_0 = arith.constant 0 : i32
    %c0_i32_1 = arith.constant 0 : i32
    return %c0_i32, %c0_i32_0 : i32, i32
  }
  func.func @transform_4(%arg0: i32) -> (i32, i32) {
    %c0_i32 = arith.constant 0 : i32
    %c0_i32_0 = arith.constant 0 : i32
    %c0_i32_1 = arith.constant 0 : i32
    return %c0_i32, %c0_i32_0 : i32, i32
  }
  func.func @transform_5(%arg0: i32) -> (i32, i32) {
    %c0_i32 = arith.constant 0 : i32
    %c0_i32_0 = arith.constant 0 : i32
    return %arg0, %c0_i32 : i32, i32
  }
}

module attributes {stable_mosaic.version = 11 : i64} {
  func.func @_mlp_kernel(%arg0: i32, %arg1: memref<8x16xf32, #tpu.memory_space<vmem>>, %arg2: memref<16x32xf32, #tpu.memory_space<vmem>>, %arg3: memref<1x32xf32, #tpu.memory_space<vmem>>, %arg4: memref<1x32xf32, #tpu.memory_space<vmem>>, %arg5: memref<1x1xf32, #tpu.memory_space<vmem>>, %arg6: memref<8x1xf32, #tpu.memory_space<vmem>>) attributes {dimension_semantics = [#tpu.dimension_semantics<parallel>], iteration_bounds = array<i64: 1>, scalar_prefetch = 0 : i64, scratch_operands = 0 : i64, tpu.core_type = #tpu.core_type<tc>, window_params = [{transform_indices = @transform_0, window_bounds = array<i64: 8, 16>}, {pipeline_mode = #tpu.pipeline_mode<synchronous>, transform_indices = @transform_1, window_bounds = array<i64: 16, 32>}, {pipeline_mode = #tpu.pipeline_mode<synchronous>, transform_indices = @transform_2, window_bounds = array<i64: 1, 32>}, {pipeline_mode = #tpu.pipeline_mode<synchronous>, transform_indices = @transform_3, window_bounds = array<i64: 1, 32>}, {pipeline_mode = #tpu.pipeline_mode<synchronous>, transform_indices = @transform_4, window_bounds = array<i64: 1, 1>}, {transform_indices = @transform_5, window_bounds = array<i64: 8, 1>}]} {
    %c0 = arith.constant 0 : index
    %c0_0 = arith.constant 0 : index
    %0 = vector.load %arg1[%c0, %c0_0] : memref<8x16xf32, #tpu.memory_space<vmem>>, vector<8x16xf32>
    %c0_1 = arith.constant 0 : index
    %c0_2 = arith.constant 0 : index
    %1 = vector.load %arg2[%c0_1, %c0_2] : memref<16x32xf32, #tpu.memory_space<vmem>>, vector<16x32xf32>
    %cst = arith.constant dense<0.000000e+00> : vector<8x32xf32>
    %2 = tpu.matmul %0, %1, %cst {dimension_numbers = #tpu.dot_dimension_numbers<[1], [0], [0], [1], [0, 0, 1, 1], [], []>} : vector<8x16xf32>, vector<16x32xf32>, vector<8x32xf32> -> vector<8x32xf32>
    %c0_3 = arith.constant 0 : index
    %c0_4 = arith.constant 0 : index
    %3 = vector.load %arg3[%c0_3, %c0_4] : memref<1x32xf32, #tpu.memory_space<vmem>>, vector<1x32xf32>
    %4 = vector.broadcast %3 : vector<1x32xf32> to vector<8x32xf32>
    %5 = arith.addf %2, %4 : vector<8x32xf32>
    %cst_5 = arith.constant 0.000000e+00 : f32
    %6 = vector.broadcast %cst_5 : f32 to vector<8x32xf32>
    %7 = arith.maximumf %5, %6 : vector<8x32xf32>
    %c0_6 = arith.constant 0 : index
    %c0_7 = arith.constant 0 : index
    %8 = vector.load %arg4[%c0_6, %c0_7] : memref<1x32xf32, #tpu.memory_space<vmem>>, vector<1x32xf32>
    %9 = vector.broadcast %8 : vector<1x32xf32> to vector<8x32xf32>
    %10 = arith.mulf %7, %9 : vector<8x32xf32>
    %cst_8 = arith.constant dense<0.000000e+00> : vector<8xf32>
    %11 = vector.multi_reduction <add>, %10, %cst_8 [1] : vector<8x32xf32> to vector<8xf32>
    %12 = vector.shape_cast %11 : vector<8xf32> to vector<8x1xf32>
    %c0_9 = arith.constant 0 : index
    %c0_10 = arith.constant 0 : index
    %13 = vector.load %arg5[%c0_9, %c0_10] : memref<1x1xf32, #tpu.memory_space<vmem>>, vector<1x1xf32>
    %14 = vector.broadcast %13 : vector<1x1xf32> to vector<8x1xf32>
    %15 = arith.addf %12, %14 : vector<8x1xf32>
    %c0_11 = arith.constant 0 : index
    %c0_12 = arith.constant 0 : index
    %16 = vector.load %arg6[%c0_11, %c0_12] : memref<8x1xf32, #tpu.memory_space<vmem>>, vector<8x1xf32>
    tpu.vector_store %arg6[%c0_11, %c0_12], %15 {strides = array<i32>} : memref<8x1xf32, #tpu.memory_space<vmem>>, vector<8x1xf32>,
    return
  }
  func.func @transform_0(%arg0: i32) -> (i32, i32) {
    %c0_i32 = arith.constant 0 : i32
    %c0_i32_0 = arith.constant 0 : i32
    return %arg0, %c0_i32 : i32, i32
  }
  func.func @transform_1(%arg0: i32) -> (i32, i32) {
    %c0_i32 = arith.constant 0 : i32
    %c0_i32_0 = arith.constant 0 : i32
    %c0_i32_1 = arith.constant 0 : i32
    return %c0_i32, %c0_i32_0 : i32, i32
  }
  func.func @transform_2(%arg0: i32) -> (i32, i32) {
    %c0_i32 = arith.constant 0 : i32
    %c0_i32_0 = arith.constant 0 : i32
    %c0_i32_1 = arith.constant 0 : i32
    return %c0_i32, %c0_i32_0 : i32, i32
  }
  func.func @transform_3(%arg0: i32) -> (i32, i32) {
    %c0_i32 = arith.constant 0 : i32
    %c0_i32_0 = arith.constant 0 : i32
    %c0_i32_1 = arith.constant 0 : i32
    return %c0_i32, %c0_i32_0 : i32, i32
  }
  func.func @transform_4(%arg0: i32) -> (i32, i32) {
    %c0_i32 = arith.constant 0 : i32
    %c0_i32_0 = arith.constant 0 : i32
    %c0_i32_1 = arith.constant 0 : i32
    return %c0_i32, %c0_i32_0 : i32, i32
  }
  func.func @transform_5(%arg0: i32) -> (i32, i32) {
    %c0_i32 = arith.constant 0 : i32
    %c0_i32_0 = arith.constant 0 : i32
    return %arg0, %c0_i32 : i32, i32
  }
}

</mosaic_0001>

<bundles_post_ra>
// kernel: tpu_custom_call.1
= control target key start
LH: loop header
LB: loop body
LE: loop exit
PB: predicated region body
PF: predicated region fallthrough
CT: control target
= control target key end

     0   :  { %s313_s0 = inlined_call_operand.hbm [shape: f32[8,16], index: 0, kind: input, shape index: {}]   ;;  %s314_s1 = inlined_call_operand.hbm [shape: f32[16,32], index: 1, kind: input, shape index: {}]   ;;  %s315_s2 = inlined_call_operand.vmem [shape: f32[1,32], index: 2, kind: input, shape index: {}]   ;;  %s316_s3 = inlined_call_operand.vmem [shape: f32[1,32], index: 3, kind: input, shape index: {}]   ;;  %s317_s4 = inlined_call_operand.<no memory space> [shape: f32[1,1], index: 4, kind: input, shape index: {}]   ;;  %s318_s5 = inlined_call_operand.vmem [shape: f32[8,1], index: 5, kind: output, shape index: {}]  }
   0x1   :  { %v10_v0 = vstv %s317_s4 }
   0x2   :  { %11 = vst [vmem:[#allocation2] sm:$0x1] %v10_v0 }
   0x3   :  { %12 = vsyncpa [#allocation4], 0 }
   0x4   :  { %13 = vsyncpa [#allocation6], 0  ;;  %s233_s20 = smov [#allocation3]   ;;  %s234_s22 = smov [#allocation5]  }
   0x5   :  { %s20_s21 = sshll.u32 %s233_s20, 4  ;;  %s29_s23 = sshll.u32 %s234_s22, 4  ;;  %s21_s21 = int_to_ptr.vmem [resolvable:$true] %s20_s21  ;;  %s273_s23 = int_to_ptr.vmem [resolvable:$true] %s29_s23 }
   0x6   :  { %s185_s26 = scalar_lea.hbm %s313_s0, 128 }
   0x7   :  { %p186_p0 = scmp.ne.s32.totalorder %s313_s0, %s185_s26  ;;  %p189_p1 = scmp.lt.u32.totalorder %s185_s26, %s313_s0 }
   0x9   :  { %p191_p2 = pnand %p189_p1, %p186_p0 }
   0xb   :  { %194 = shalt.err (!%p191_p2)
}
   0xc   :  { %s195_s30 = scalar_lea.vmem %s21_s21, 128  ;;  %p200_p4 = scmp.lt.s32.totalorder %s21_s21, %s21_s21 }
   0xd   :  { %p196_p3 = scmp.ne.s32.totalorder %s21_s21, %s195_s30  ;;  %p201_p5 = scmp.lt.s32.totalorder %s195_s30, %s195_s30 }
   0xf   :  { %p202_p6 = por %p201_p5, %p200_p4 }
  0x11   :  { %p203_p7 = pnand %p202_p6, %p196_p3 }
  0x13   :  { %206 = shalt.err (!%p203_p7)
}
  0x14   :  { %23 = dma.hbm_to_vmem [thread:$0]  %s313_s0, 128, %s21_s21, [#allocation4]  }
  0x15   :  { %s207_s10 = scalar_lea.hbm %s314_s1, 256 }
  0x16   :  { %p208_p8 = scmp.ne.s32.totalorder %s314_s1, %s207_s10  ;;  %p211_p9 = scmp.lt.u32.totalorder %s207_s10, %s314_s1 }
  0x18   :  { %p213_p10 = pnand %p211_p9, %p208_p8 }
  0x1a   :  { %216 = shalt.err (!%p213_p10)
}
  0x1b   :  { %s217_s15 = scalar_lea.vmem %s273_s23, 256  ;;  %p222_p12 = scmp.lt.s32.totalorder %s273_s23, %s273_s23 }
  0x1c   :  { %p218_p11 = scmp.ne.s32.totalorder %s273_s23, %s217_s15  ;;  %p223_p13 = scmp.lt.s32.totalorder %s217_s15, %s217_s15 }
  0x1e   :  { %p224_p0 = por %p223_p13, %p222_p12 }
  0x20   :  { %p225_p1 = pnand %p224_p0, %p218_p11 }
  0x22   :  { %228 = shalt.err (!%p225_p1)
}
  0x23   :  { %s235_s0 = smov 128   ;;  %s236_s16 = smov 8  }
  0x24   :  { %35 = dma.hbm_to_vmem [thread:$0]  %s314_s1, 256, %s273_s23, [#allocation6], %s235_s0, %s235_s0, %s236_s16  }
  0x25   :  { %229 = dma.done.wait [#allocation4], 128  }
  0x26   :  { %230 = vsyncadd [#allocation4], 4294967168 }
  0x27   :  { %231 = dma.done.wait [#allocation6], 256  }
  0x28   :  { %232 = vsyncadd [#allocation6], 4294967040  ;;  %v237_v1 = vmov 0.0|0.0   ;;  %vm238_vm0 = vmmov 0   ;;  %v239_v2 = vmov 0.0   ;;  %v49_v3 = vld [vmem:[#allocation5] sm:$0xff] }
  0x29   :  { %175 = vmatprep.subr.bf16.mxu0 %v237_v1  ;;  %172 = vmatprep.mubr.msk.f32.mxu0 %vm238_vm0, %v239_v2  ;;  %v50_v4 = vld [vmem:[#allocation5 + $0x8] sm:$0xff]  ;;  %v48_v6 = vld [vmem:[#allocation3] sm:$0xff]  ;;  %vm58_vm1 = vcmask 130048   ;;  %v161_v7 = vld [vmem:[%s315_s2] ss:$0 sm:$0xff]  ;;  %vm141_vm2 = vcmask 261120  }
  0x2a   :  { %v176_v5 = vpack.c.bf16 %v50_v4, %v49_v3  ;;  %v163_v11 = vld [vmem:[%s316_s3] ss:$0 sm:$0xff]  ;;  %vm153_vm3 = vcmask 7168  }
  0x2b   :  { %v164_v15 = vld [vmem:[#allocation2] ss:$0 sm:$0xff] }
  0x2c   :  { %177 = vmatpush3.bf16.msra.mxu0 %v176_v5 }
  0x2f   :  { %173 = vmatmul.mubr.msk.f32.vlgmr.msra.gmra.mrb[0].mxu0 %vm58_vm1, %v48_v6 }
 0x102   :  { %v128_v8 = vpop.f32.mrb[0].mxu0 }
 0x103   :  { %v129_v9 = vadd.f32 %v161_v7, %v128_v8  ;;  %v174_v10 = vpop.f32.mrb[1].mxu0 }
 0x105   :  { %v132_v12 = vmax.f32 %v129_v9, 0.0 }
 0x107   :  { %v140_v13 = vmul.f32 %v163_v11, %v132_v12 }
 0x109   :  { %v142_v14 = vsel %vm141_vm2, %v140_v13, 0.0 }
 0x10a   :  { %143 = vadd.xlane.f32.xlu0 %v142_v14 }
 0x197   :  { %v144_v16 = vpop.xlane.xlu0 %143 }
 0x198   :  { %v152_v17 = vadd.f32 %v164_v15, %v144_v16 }
 0x19a   :  { %154 = vst.msk [vmem:[%s318_s5] sm:$0xff] %vm153_vm3, %v152_v17 }
 0x19b   :  { %159 = vsyncpa [#allocation4], 1 }
 0x19c   :  { %160 = vsyncpa [#allocation6], 1 }

// kernel: tpu_custom_call.1
= control target key start
LH: loop header
LB: loop body
LE: loop exit
PB: predicated region body
PF: predicated region fallthrough
CT: control target
= control target key end

     0   :  { %s313_s0 = inlined_call_operand.hbm [shape: f32[8,16], index: 0, kind: input, shape index: {}]   ;;  %s314_s1 = inlined_call_operand.hbm [shape: f32[16,32], index: 1, kind: input, shape index: {}]   ;;  %s315_s2 = inlined_call_operand.vmem [shape: f32[1,32], index: 2, kind: input, shape index: {}]   ;;  %s316_s3 = inlined_call_operand.vmem [shape: f32[1,32], index: 3, kind: input, shape index: {}]   ;;  %s317_s4 = inlined_call_operand.<no memory space> [shape: f32[1,1], index: 4, kind: input, shape index: {}]   ;;  %s318_s5 = inlined_call_operand.vmem [shape: f32[8,1], index: 5, kind: output, shape index: {}]  }
   0x1   :  { %v10_v0 = vstv %s317_s4 }
   0x2   :  { %11 = vst [vmem:[#allocation2] sm:$0x1] %v10_v0 }
   0x3   :  { %12 = vsyncpa [#allocation4], 0 }
   0x4   :  { %13 = vsyncpa [#allocation6], 0  ;;  %s233_s20 = smov [#allocation3]   ;;  %s234_s22 = smov [#allocation5]  }
   0x5   :  { %s20_s21 = sshll.u32 %s233_s20, 4  ;;  %s29_s23 = sshll.u32 %s234_s22, 4  ;;  %s21_s21 = int_to_ptr.vmem [resolvable:$true] %s20_s21  ;;  %s273_s23 = int_to_ptr.vmem [resolvable:$true] %s29_s23 }
   0x6   :  { %s185_s26 = scalar_lea.hbm %s313_s0, 128 }
   0x7   :  { %p186_p0 = scmp.ne.s32.totalorder %s313_s0, %s185_s26  ;;  %p189_p1 = scmp.lt.u32.totalorder %s185_s26, %s313_s0 }
   0x9   :  { %p191_p2 = pnand %p189_p1, %p186_p0 }
   0xb   :  { %194 = shalt.err (!%p191_p2)
}
   0xc   :  { %s195_s30 = scalar_lea.vmem %s21_s21, 128  ;;  %p200_p4 = scmp.lt.s32.totalorder %s21_s21, %s21_s21 }
   0xd   :  { %p196_p3 = scmp.ne.s32.totalorder %s21_s21, %s195_s30  ;;  %p201_p5 = scmp.lt.s32.totalorder %s195_s30, %s195_s30 }
   0xf   :  { %p202_p6 = por %p201_p5, %p200_p4 }
  0x11   :  { %p203_p7 = pnand %p202_p6, %p196_p3 }
  0x13   :  { %206 = shalt.err (!%p203_p7)
}
  0x14   :  { %23 = dma.hbm_to_vmem [thread:$0]  %s313_s0, 128, %s21_s21, [#allocation4]  }
  0x15   :  { %s207_s10 = scalar_lea.hbm %s314_s1, 256 }
  0x16   :  { %p208_p8 = scmp.ne.s32.totalorder %s314_s1, %s207_s10  ;;  %p211_p9 = scmp.lt.u32.totalorder %s207_s10, %s314_s1 }
  0x18   :  { %p213_p10 = pnand %p211_p9, %p208_p8 }
  0x1a   :  { %216 = shalt.err (!%p213_p10)
}
  0x1b   :  { %s217_s15 = scalar_lea.vmem %s273_s23, 256  ;;  %p222_p12 = scmp.lt.s32.totalorder %s273_s23, %s273_s23 }
  0x1c   :  { %p218_p11 = scmp.ne.s32.totalorder %s273_s23, %s217_s15  ;;  %p223_p13 = scmp.lt.s32.totalorder %s217_s15, %s217_s15 }
  0x1e   :  { %p224_p0 = por %p223_p13, %p222_p12 }
  0x20   :  { %p225_p1 = pnand %p224_p0, %p218_p11 }
  0x22   :  { %228 = shalt.err (!%p225_p1)
}
  0x23   :  { %s235_s0 = smov 128   ;;  %s236_s16 = smov 8  }
  0x24   :  { %35 = dma.hbm_to_vmem [thread:$0]  %s314_s1, 256, %s273_s23, [#allocation6], %s235_s0, %s235_s0, %s236_s16  }
  0x25   :  { %229 = dma.done.wait [#allocation4], 128  }
  0x26   :  { %230 = vsyncadd [#allocation4], 4294967168 }
  0x27   :  { %231 = dma.done.wait [#allocation6], 256  }
  0x28   :  { %232 = vsyncadd [#allocation6], 4294967040  ;;  %v237_v1 = vmov 0.0|0.0   ;;  %vm238_vm0 = vmmov 0   ;;  %v239_v2 = vmov 0.0   ;;  %v49_v3 = vld [vmem:[#allocation5] sm:$0xff] }
  0x29   :  { %175 = vmatprep.subr.bf16.mxu0 %v237_v1  ;;  %172 = vmatprep.mubr.msk.f32.mxu0 %vm238_vm0, %v239_v2  ;;  %v50_v4 = vld [vmem:[#allocation5 + $0x8] sm:$0xff]  ;;  %v48_v6 = vld [vmem:[#allocation3] sm:$0xff]  ;;  %vm58_vm1 = vcmask 130048   ;;  %v161_v7 = vld [vmem:[%s315_s2] ss:$0 sm:$0xff]  ;;  %vm141_vm2 = vcmask 261120  }
  0x2a   :  { %v176_v5 = vpack.c.bf16 %v50_v4, %v49_v3  ;;  %v163_v11 = vld [vmem:[%s316_s3] ss:$0 sm:$0xff]  ;;  %vm153_vm3 = vcmask 7168  }
  0x2b   :  { %v164_v15 = vld [vmem:[#allocation2] ss:$0 sm:$0xff] }
  0x2c   :  { %177 = vmatpush3.bf16.msra.mxu0 %v176_v5 }
  0x2f   :  { %173 = vmatmul.mubr.msk.f32.vlgmr.msra.gmra.mrb[0].mxu0 %vm58_vm1, %v48_v6 }
 0x102   :  { %v128_v8 = vpop.f32.mrb[0].mxu0 }
 0x103   :  { %v129_v9 = vadd.f32 %v161_v7, %v128_v8  ;;  %v174_v10 = vpop.f32.mrb[1].mxu0 }
 0x105   :  { %v132_v12 = vmax.f32 %v129_v9, 0.0 }
 0x107   :  { %v140_v13 = vmul.f32 %v163_v11, %v132_v12 }
 0x109   :  { %v142_v14 = vsel %vm141_vm2, %v140_v13, 0.0 }
 0x10a   :  { %143 = vadd.xlane.f32.xlu0 %v142_v14 }
 0x197   :  { %v144_v16 = vpop.xlane.xlu0 %143 }
 0x198   :  { %v152_v17 = vadd.f32 %v164_v15, %v144_v16 }
 0x19a   :  { %154 = vst.msk [vmem:[%s318_s5] sm:$0xff] %vm153_vm3, %v152_v17 }
 0x19b   :  { %159 = vsyncpa [#allocation4], 1 }
 0x19c   :  { %160 = vsyncpa [#allocation6], 1 }

</bundles_post_ra>
